<compile_context>
chip_gen: v5e
topology: v5e:2x2
jax: 0.10.0
libtpu: 0.0.40
codegen_flags: <defaults>
</compile_context>

<pallas_src>
import math

import jax
import jax.numpy as jnp
from jax.experimental import pallas as pl
from jax.experimental.pallas import tpu as pltpu


def finaltanh_f_kernel(z_ref, w_ref, b_ref, o_ref):
    # (tm, C) x (C, tn) on the MXU, f32 accumulation, then bias (VPU),
    # relu (VPU), tanh (EUP). With grid > 1 the BlockSpec pipeline overlaps
    # the next tile's DMA/matmul with this tile's epilogue.
    y = jnp.dot(z_ref[...], w_ref[...], preferred_element_type=jnp.float32)
    y = y + b_ref[...]                       # bias broadcast over batch rows
    y = jnp.maximum(y, 0.0)                  # relu
    o_ref[...] = jnp.tanh(y).astype(o_ref.dtype)


def _pick_tile(dim, target, align):
    """Full dim if it fits (always legal), else the largest aligned tile <= target."""
    if dim <= target:
        return dim
    return max(align, (target // align) * align)


def finaltanh_f_forward(z, weight_t, bias):
    """z: (..., C) f32; weight_t: (C, C*C) f32; bias: (1, C*C) f32 -> (..., C, C)."""
    *lead, C = z.shape
    B = int(math.prod(lead)) if lead else 1
    CC = C * C
    assert weight_t.shape == (C, CC)
    assert bias.shape == (1, CC)

    z2d = z.reshape(B, C)

    # Tile sizes: sublane-aligned batch tile, lane-aligned output-column tile.
    tm = _pick_tile(B, 256, 8)      # rows of z / output
    tn = _pick_tile(CC, 512, 128)   # output columns (= weight columns)

    grid = (pl.cdiv(CC, tn), pl.cdiv(B, tm))   # (j outer, i inner)

    # Double-buffered in/out blocks + headroom; keep well under v7x's 64 MiB.
    elt = 4  # f32
    need = 2 * elt * (tm * C + C * tn + tn + tm * tn)
    vmem_limit = int(min(max(2 * need, 32 * 1024 * 1024), 56 * 1024 * 1024))

    out = pl.pallas_call(
        finaltanh_f_kernel,
        out_shape=jax.ShapeDtypeStruct((B, CC), jnp.float32),
        grid_spec=pltpu.PrefetchScalarGridSpec(
            num_scalar_prefetch=0,
            grid=grid,
            in_specs=[
                pl.BlockSpec((tm, C), lambda j, i: (i, 0)),    # z rows
                pl.BlockSpec((C, tn), lambda j, i: (0, j)),    # weight column slice
                pl.BlockSpec((1, tn), lambda j, i: (0, j)),    # bias column slice
            ],
            out_specs=pl.BlockSpec((tm, tn), lambda j, i: (i, j)),
        ),
        compiler_params=pltpu.CompilerParams(
            # j (weight columns): keep sequential so the weight slice stays
            # resident across the inner batch sweep; i (batch): parallel so
            # v7x megacore can shard it across both TensorCores.
            dimension_semantics=("arbitrary", "parallel"),
            vmem_limit_bytes=vmem_limit,
        ),
    )(z2d, weight_t, bias)

    return out.reshape(*lead, C, C)


def init_params(key, input_channels):
    """Deterministic init matching torch.nn.Linear default (U[-1/sqrt(in), 1/sqrt(in)])."""
    k_w, k_b = jax.random.split(key)
    bound = 1.0 / jnp.sqrt(input_channels)
    # torch weight shape: (out=in*in, in); we store the transpose (in, in*in)
    w = jax.random.uniform(
        k_w, (input_channels, input_channels * input_channels),
        minval=-bound, maxval=bound, dtype=jnp.float32)
    b = jax.random.uniform(
        k_b, (1, input_channels * input_channels),
        minval=-bound, maxval=bound, dtype=jnp.float32)
    return w, b


def _reference(z, weight_t, bias):
    *lead, C = z.shape
    y = z.reshape(-1, C) @ weight_t + bias
    return jnp.tanh(jnp.maximum(y, 0.0)).reshape(*lead, C, C)


if __name__ == "__main__":
    key = jax.random.PRNGKey(0)

    # --- small demo shape (grid collapses to (1, 1)) -----------------------
    k_z, k_p, k_z2, k_p2 = jax.random.split(key, 4)
    batch, input_channels = 8, 16
    z = jax.random.normal(k_z, (batch, input_channels), dtype=jnp.float32)
    weight_t, bias = init_params(k_p, input_channels)

    out = jax.block_until_ready(finaltanh_f_forward(z, weight_t, bias))
    ref = _reference(z, weight_t, bias)
    assert out.shape == (batch, input_channels, input_channels)
    assert jnp.allclose(out, ref, atol=1e-5, rtol=1e-5)

    # --- larger shape exercising both grid axes + remainder batch block ----
    batch2, input_channels2 = 272, 32          # CC=1024 -> tn=512; B=272 -> tm=256
    z2 = jax.random.normal(k_z2, (batch2, input_channels2), dtype=jnp.float32)
    weight_t2, bias2 = init_params(k_p2, input_channels2)

    out2 = jax.block_until_ready(finaltanh_f_forward(z2, weight_t2, bias2))
    ref2 = _reference(z2, weight_t2, bias2)
    assert out2.shape == (batch2, input_channels2, input_channels2)
    assert jnp.allclose(out2, ref2, atol=1e-5, rtol=1e-5)

    print("KERNEL_OK")
</pallas_src>

<mosaic_0001>
module attributes {stable_mosaic.version = 11 : i64} {
  func.func @finaltanh_f_kernel(%arg0: i32, %arg1: i32, %arg2: memref<8x16xf32, #tpu.memory_space<vmem>>, %arg3: memref<16x256xf32, #tpu.memory_space<vmem>>, %arg4: memref<1x256xf32, #tpu.memory_space<vmem>>, %arg5: memref<8x256xf32, #tpu.memory_space<vmem>>) attributes {dimension_semantics = [#tpu.dimension_semantics<arbitrary>, #tpu.dimension_semantics<parallel>], iteration_bounds = array<i64: 1, 1>, scalar_prefetch = 0 : i64, scratch_operands = 0 : i64, tpu.core_type = #tpu.core_type<tc>, window_params = [{transform_indices = @transform_0, window_bounds = array<i64: 8, 16>}, {transform_indices = @transform_1, window_bounds = array<i64: 16, 256>}, {transform_indices = @transform_2, window_bounds = array<i64: 1, 256>}, {transform_indices = @transform_3, window_bounds = array<i64: 8, 256>}]} {
    %c0 = arith.constant 0 : index
    %c0_0 = arith.constant 0 : index
    %0 = vector.load %arg2[%c0, %c0_0] : memref<8x16xf32, #tpu.memory_space<vmem>>, vector<8x16xf32>
    %c0_1 = arith.constant 0 : index
    %c0_2 = arith.constant 0 : index
    %1 = vector.load %arg3[%c0_1, %c0_2] : memref<16x256xf32, #tpu.memory_space<vmem>>, vector<16x256xf32>
    %cst = arith.constant dense<0.000000e+00> : vector<8x256xf32>
    %2 = tpu.matmul %0, %1, %cst {dimension_numbers = #tpu.dot_dimension_numbers<[1], [0], [0], [1], [0, 0, 1, 1], [], []>} : vector<8x16xf32>, vector<16x256xf32>, vector<8x256xf32> -> vector<8x256xf32>
    %c0_3 = arith.constant 0 : index
    %c0_4 = arith.constant 0 : index
    %3 = vector.load %arg4[%c0_3, %c0_4] : memref<1x256xf32, #tpu.memory_space<vmem>>, vector<1x256xf32>
    %4 = vector.broadcast %3 : vector<1x256xf32> to vector<8x256xf32>
    %5 = arith.addf %2, %4 : vector<8x256xf32>
    %cst_5 = arith.constant 0.000000e+00 : f32
    %6 = vector.broadcast %cst_5 : f32 to vector<8x256xf32>
    %7 = arith.maximumf %5, %6 : vector<8x256xf32>
    %8 = math.tanh %7 : vector<8x256xf32>
    %c0_6 = arith.constant 0 : index
    %c0_7 = arith.constant 0 : index
    %9 = vector.load %arg5[%c0_6, %c0_7] : memref<8x256xf32, #tpu.memory_space<vmem>>, vector<8x256xf32>
    tpu.vector_store %arg5[%c0_6, %c0_7], %8 {strides = array<i32>} : memref<8x256xf32, #tpu.memory_space<vmem>>, vector<8x256xf32>,
    return
  }
  func.func @transform_0(%arg0: i32, %arg1: i32) -> (i32, i32) {
    %c0_i32 = arith.constant 0 : i32
    %c0_i32_0 = arith.constant 0 : i32
    return %arg1, %c0_i32 : i32, i32
  }
  func.func @transform_1(%arg0: i32, %arg1: i32) -> (i32, i32) {
    %c0_i32 = arith.constant 0 : i32
    %c0_i32_0 = arith.constant 0 : i32
    return %c0_i32, %arg0 : i32, i32
  }
  func.func @transform_2(%arg0: i32, %arg1: i32) -> (i32, i32) {
    %c0_i32 = arith.constant 0 : i32
    %c0_i32_0 = arith.constant 0 : i32
    return %c0_i32, %arg0 : i32, i32
  }
  func.func @transform_3(%arg0: i32, %arg1: i32) -> (i32, i32) {
    %c0_i32 = arith.constant 0 : i32
    return %arg1, %arg0 : i32, i32
  }
}

</mosaic_0001>

<bundles_post_ra>
// kernel: tpu_custom_call.1
= control target key start
LH: loop header
LB: loop body
LE: loop exit
PB: predicated region body
PF: predicated region fallthrough
CT: control target
= control target key end

     0   :  { %8 = vsyncpa [#allocation3], 0  ;;  %s289_s0 = inlined_call_operand.hbm [shape: f32[8,16], index: 0, kind: input, shape index: {}]   ;;  %s290_s1 = inlined_call_operand.hbm [shape: f32[16,256], index: 1, kind: input, shape index: {}]   ;;  %s291_s2 = inlined_call_operand.hbm [shape: f32[1,256], index: 2, kind: input, shape index: {}]   ;;  %s292_s3 = inlined_call_operand.hbm [shape: f32[8,256], index: 3, kind: output, shape index: {}]  }
   0x1   :  { %9 = vsyncpa [#allocation6], 0  ;;  %s26_s14 = sshll.u32 %s290_s1, 4  ;;  %s27_s14 = int_to_ptr.hbm [resolvable:$true] %s26_s14 }
   0x2   :  { %10 = vsyncpa [#allocation4], 0  ;;  %s251_s15 = smov [#allocation5]   ;;  %s16_s19 = sshll.u32 %s289_s0, 4  ;;  %s17_s19 = int_to_ptr.hbm [resolvable:$true] %s16_s19 }
   0x3   :  { %s28_s16 = sshll.u32 %s251_s15, 4  ;;  %s252_s20 = smov 256   ;;  %s29_s16 = int_to_ptr.vmem [resolvable:$true] %s28_s16 }
   0x4   :  { %s253_s21 = smov 16   ;;  %s254_s22 = smov [#allocation2]  }
   0x5   :  { %34 = dma.hbm_to_vmem [thread:$0]  %s27_s14, 512, %s29_s16, [#allocation6], %s252_s20, %s252_s20, %s253_s21  }
   0x6   :  { %s18_s23 = sshll.u32 %s254_s22, 4  ;;  %s40_s26 = sshll.u32 %s291_s2, 4  ;;  %s19_s23 = int_to_ptr.vmem [resolvable:$true] %s18_s23  ;;  %s41_s26 = int_to_ptr.hbm [resolvable:$true] %s40_s26 }
   0x7   :  { %21 = dma.hbm_to_vmem [thread:$0]  %s17_s19, 128, %s19_s23, [#allocation3]  }
   0x8   :  { %s255_s1 = smov [#allocation7]  }
   0x9   :  { %s42_s27 = sshll.u32 %s255_s1, 4  ;;  %s43_s27 = int_to_ptr.vmem [resolvable:$true] %s42_s27 }
   0xa   :  { %45 = dma.hbm_to_vmem [thread:$0]  %s41_s26, 32, %s43_s27, [#allocation6]  }
   0xb   :  { %245 = dma.done.wait [#allocation3], 128  }
   0xc   :  { %246 = vsyncadd [#allocation3], 4294967168 }
   0xd   :  { %247 = dma.done.wait [#allocation6], 544  }
   0xe   :  { %248 = vsyncadd [#allocation6], 4294966752  ;;  %v61_v0 = vld [vmem:[#allocation5 + $0x10] sm:$0xff]  ;;  %v62_v1 = vld [vmem:[#allocation5 + $0x18] sm:$0xff]  ;;  %vm69_vm0 = vcmask 130048   ;;  %s256_s0 = smov [#allocation8]  }
   0xf   :  { %v59_v2 = vld [vmem:[#allocation5] sm:$0xff]  ;;  %87 = vmatpush.msra.mxu0 %v61_v0  ;;  %107 = vmatpush.msra.mxu1 %v62_v1  ;;  %v60_v3 = vld [vmem:[#allocation5 + $0x8] sm:$0xff]  ;;  %v58_v4 = vld [vmem:[#allocation2] sm:$0xff]  ;;  %s124_s2 = sshll.u32 %s256_s0, 4  ;;  %s126_s30 = sshll.u32 %s292_s3, 4  ;;  %s125_s2 = int_to_ptr.vmem [resolvable:$true] %s124_s2  ;;  %s127_s30 = int_to_ptr.hbm [resolvable:$true] %s126_s30 }
  0x10   :  { %v63_v5 = vld [vmem:[#allocation7] sm:$0x3] }
  0x11   :  { %88 = vmatpush.msra.mxu0 %v59_v2  ;;  %108 = vmatpush.msra.mxu1 %v60_v3  ;;  %v65_v6 = vperm.slane %v63_v5, 0  ;;  %v66_v7 = vperm.slane %v63_v5, 1 }
  0x12   :  { %137 = vmatmul.msk.f32.vlgmr.msra.gmra.mxu0 %vm69_vm0, %v58_v4  ;;  %138 = vmatmul.msk.f32.vlgmr.msra.gmra.mxu1 %vm69_vm0, %v58_v4 }
  0x8f   :  { %v90_v8 = vpop.f32.mrf.mxu0  ;;  %v110_v9 = vpop.f32.mrf.mxu1 }
  0x90   :  { %v91_v10 = vadd.f32 %v90_v8, %v65_v6  ;;  %v111_v11 = vadd.f32 %v110_v9, %v66_v7 }
  0x92   :  { %v113_v12 = vmax.f32 %v91_v10, 0.0  ;;  %v114_v13 = vmax.f32 %v111_v11, 0.0 }
  0x94   :  { %145 = vtanh.f32 %v113_v12 }
  0x95   :  { %147 = vtanh.f32 %v114_v13 }
  0x9a   :  { %v146_v14 = vpop.eup %145 }
  0x9b   :  { %v148_v15 = vpop.eup %147  ;;  %117 = vst [vmem:[#allocation8] sm:$0xff] %v146_v14 }
  0x9c   :  { %118 = vst [vmem:[#allocation8 + $0x8] sm:$0xff] %v148_v15 }
  0x9d   :  { %129 = dma.vmem_to_hbm [thread:$0]  %s125_s2, 256, %s127_s30, [#allocation4]  }
  0x9e   :  { %249 = dma.done.wait [#allocation4], 256  }
  0x9f   :  { %250 = vsyncadd [#allocation4], 4294967040 }
  0xa0   :  { %134 = vsyncpa [#allocation3], 1 }
  0xa1   :  { %135 = vsyncpa [#allocation6], 1 }
  0xa2   :  { %136 = vsyncpa [#allocation4], 1 }

</bundles_post_ra>
